<compile_context>
chip_gen: v6e
topology: v6e:2x2x1
jax: 0.10.0
libtpu: 0.0.40
codegen_flags: <defaults>
</compile_context>

<pallas_src>
import itertools

import jax
import jax.numpy as jnp
from jax.experimental import pallas as pl
from jax.experimental.pallas import tpu as pltpu

_EPS = 1e-8          # torch.nn.CosineSimilarity default eps
_LANE = 128


def _round_up(x, m):
    return (x + m - 1) // m * m


def _vmem_capacity_bytes():
    """Best-effort per-core VMEM query; conservative (v7x, 64 MiB) fallback."""
    try:
        info = pltpu.get_tpu_info()
        cap = getattr(info, "vmem_capacity_bytes", None)
        if cap:
            return int(cap)
    except Exception:
        pass
    return 64 * 1024 * 1024


def _make_kernel(n, d, tile_b, tile_d, stat_pairs, needs_mask):
    """Kernel over args = (x_0..x_{n-1}, o_ref, acc_ref).

    x_i   : (TILE_B, TILE_D) block of flattened input i, native dtype.
    o_ref : (TILE_B, NSTATS) f32 output block (written on last D step only).
    acc   : (TILE_B, NSTATS) f32 VMEM scratch accumulator.
    stat_pairs: list of (i, j) with i<=j; column p accumulates sum_d x_i*x_j.
    """

    def kernel(*args):
        x_refs = args[:n]
        o_ref = args[n]
        acc_ref = args[n + 1]
        k = pl.program_id(1)

        @pl.when(k == 0)
        def _init():
            acc_ref[...] = jnp.zeros_like(acc_ref)

        if needs_mask:
            lane = jax.lax.broadcasted_iota(jnp.int32, (tile_b, tile_d), 1)
            valid = (k * tile_d + lane) < d

        xs = []
        for r in x_refs:
            x = r[...].astype(jnp.float32)   # no-op for f32; one upcast for bf16
            if needs_mask:
                x = jnp.where(valid, x, 0.0)  # zero OOB lanes (garbage-safe)
            xs.append(x)

        # VPU products + lane reduce: pair dots (i<j) and squared norms (i==i).
        cols = [jnp.sum(xs[i] * xs[j], axis=-1, keepdims=True)
                for (i, j) in stat_pairs]
        acc_ref[...] += jnp.concatenate(cols, axis=-1)

        @pl.when(k == pl.num_programs(1) - 1)
        def _write():
            o_ref[...] = acc_ref[...]

    return kernel


def class_distinctiveness_loss(sal_tensor_list):
    """JAX/Pallas equivalent of ClassDistinctivenessLoss.forward."""
    n = len(sal_tensor_list)
    assert n >= 2, "need at least two saliency tensors"
    shape = sal_tensor_list[0].shape
    dtype = sal_tensor_list[0].dtype
    for t in sal_tensor_list:
        assert t.shape == shape and t.dtype == dtype

    # Per-sample flatten (== torch .view(B, -1)); contiguous reshape is free.
    flats = [t.reshape(t.shape[0], -1) for t in sal_tensor_list]
    b, d = flats[0].shape
    itemsize = jnp.dtype(dtype).itemsize

    # Sublane packing granularity per dtype (physical (8,128) 32-bit tiling).
    if itemsize >= 4:
        min_rows = 8
    elif itemsize == 2:
        min_rows = 16
    else:
        min_rows = 32
    tile_b = min_rows if b >= min_rows else b
    eff_rows = _round_up(tile_b, min_rows)        # VMEM-accurate row count

    # Generation-aware block / VMEM budget.
    if _vmem_capacity_bytes() >= 100 * 1024 * 1024:   # v5e / v6e (128 MiB)
        block_bytes_target = 8 * 1024 * 1024
        vmem_limit = 96 * 1024 * 1024
    else:                                             # v7x-class (64 MiB/TC)
        block_bytes_target = 4 * 1024 * 1024
        vmem_limit = 48 * 1024 * 1024
    # Steady state: 2 (double buffer) * n blocks  -> 24 MiB (v7x) / 48 MiB.

    d_pad128 = _round_up(d, _LANE)
    tile_d = (block_bytes_target // (eff_rows * itemsize)) // _LANE * _LANE
    tile_d = max(_LANE, min(tile_d, d_pad128))
    num_k = pl.cdiv(d, tile_d)
    num_b_tiles = pl.cdiv(b, tile_b)
    needs_mask = (d % tile_d) != 0

    pair_list = list(itertools.combinations(range(n), 2))
    stat_pairs = pair_list + [(i, i) for i in range(n)]
    npairs = len(pair_list)
    nstats = len(stat_pairs)

    grid_spec = pltpu.PrefetchScalarGridSpec(
        num_scalar_prefetch=0,
        grid=(num_b_tiles, num_k),                 # reduction axis last
        in_specs=[pl.BlockSpec((tile_b, tile_d), lambda bi, k: (bi, k))
                  for _ in range(n)],
        out_specs=pl.BlockSpec((tile_b, nstats), lambda bi, k: (bi, 0)),
        scratch_shapes=[pltpu.VMEM((tile_b, nstats), jnp.float32)],
    )

    stats = pl.pallas_call(
        _make_kernel(n, d, tile_b, tile_d, stat_pairs, needs_mask),
        out_shape=jax.ShapeDtypeStruct((b, nstats), jnp.float32),
        grid_spec=grid_spec,
        compiler_params=pltpu.CompilerParams(
            dimension_semantics=("parallel", "arbitrary"),
            vmem_limit_bytes=vmem_limit,
        ),
    )(*flats)                                      # (B, npairs + N) float32

    # Tiny finalization in plain JAX: cos = dot / max(||a||*||b||, eps).
    dots = stats[:, :npairs]                       # (B, npairs)
    nsq = stats[:, npairs:]                        # (B, N) squared norms
    i_idx = jnp.array([i for i, _ in pair_list])
    j_idx = jnp.array([j for _, j in pair_list])
    denom = jnp.maximum(jnp.sqrt(nsq[:, i_idx] * nsq[:, j_idx]), _EPS)
    # mean over batch then pairs == mean over all (equal counts per pair)
    return jnp.mean(jnp.abs(dots / denom))


if __name__ == "__main__":
    key = jax.random.PRNGKey(0)
    B, C, H, W = 2, 4, 16, 16
    N_TENSORS = 3  # -> 3 pair combinations

    keys = jax.random.split(key, N_TENSORS)
    sal_list = [
        jax.random.normal(k, (B, C, H, W), dtype=jnp.float32) for k in keys
    ]

    loss = class_distinctiveness_loss(sal_list)
    jax.block_until_ready(loss)

    # Pure-JAX reference of the same math (torch cosine-sim eps semantics).
    def _ref(tensors):
        flat = [t.reshape(t.shape[0], -1) for t in tensors]
        vals = []
        for a, c in itertools.combinations(flat, 2):
            dot = jnp.sum(a * c, axis=1)
            denom = jnp.maximum(
                jnp.linalg.norm(a, axis=1) * jnp.linalg.norm(c, axis=1), _EPS)
            vals.append(jnp.mean(jnp.abs(dot / denom)))
        return jnp.mean(jnp.stack(vals))

    ref = _ref(sal_list)
    assert jnp.allclose(loss, ref, atol=1e-5, rtol=1e-5), (loss, ref)

    print("KERNEL_OK")
</pallas_src>

<mosaic_0001>
module attributes {stable_mosaic.version = 11 : i64} {
  func.func @kernel(%arg0: i32, %arg1: i32, %arg2: memref<2x1024xf32, #tpu.memory_space<vmem>>, %arg3: memref<2x1024xf32, #tpu.memory_space<vmem>>, %arg4: memref<2x1024xf32, #tpu.memory_space<vmem>>, %arg5: memref<2x6xf32, #tpu.memory_space<vmem>>, %arg6: memref<2x6xf32, #tpu.memory_space<vmem>>) attributes {dimension_semantics = [#tpu.dimension_semantics<parallel>, #tpu.dimension_semantics<arbitrary>], iteration_bounds = array<i64: 1, 1>, scalar_prefetch = 0 : i64, scratch_operands = 1 : i64, tpu.core_type = #tpu.core_type<tc>, window_params = [{transform_indices = @transform_0, window_bounds = array<i64: 2, 1024>}, {transform_indices = @transform_1, window_bounds = array<i64: 2, 1024>}, {transform_indices = @transform_2, window_bounds = array<i64: 2, 1024>}, {transform_indices = @transform_3, window_bounds = array<i64: 2, 6>}]} {
    %c0_i32 = arith.constant 0 : i32
    %0 = arith.cmpi eq, %arg1, %c0_i32 : i32
    %1 = arith.extui %0 : i1 to i32
    %c0_i32_0 = arith.constant 0 : i32
    %2 = arith.cmpi ne, %1, %c0_i32_0 : i32
    scf.if %2 {
      %cst_17 = arith.constant 0.000000e+00 : f32
      %31 = vector.broadcast %cst_17 : f32 to vector<2x6xf32>
      %c0_18 = arith.constant 0 : index
      %c0_19 = arith.constant 0 : index
      %32 = vector.load %arg6[%c0_18, %c0_19] : memref<2x6xf32, #tpu.memory_space<vmem>>, vector<2x6xf32>
      tpu.vector_store %arg6[%c0_18, %c0_19], %31 {strides = array<i32>} : memref<2x6xf32, #tpu.memory_space<vmem>>, vector<2x6xf32>,
    } else {
    }
    %c0 = arith.constant 0 : index
    %c0_1 = arith.constant 0 : index
    %3 = vector.load %arg2[%c0, %c0_1] : memref<2x1024xf32, #tpu.memory_space<vmem>>, vector<2x1024xf32>
    %c0_2 = arith.constant 0 : index
    %c0_3 = arith.constant 0 : index
    %4 = vector.load %arg3[%c0_2, %c0_3] : memref<2x1024xf32, #tpu.memory_space<vmem>>, vector<2x1024xf32>
    %c0_4 = arith.constant 0 : index
    %c0_5 = arith.constant 0 : index
    %5 = vector.load %arg4[%c0_4, %c0_5] : memref<2x1024xf32, #tpu.memory_space<vmem>>, vector<2x1024xf32>
    %6 = arith.mulf %3, %4 : vector<2x1024xf32>
    %cst = arith.constant dense<0.000000e+00> : vector<2xf32>
    %7 = vector.multi_reduction <add>, %6, %cst [1] : vector<2x1024xf32> to vector<2xf32>
    %8 = vector.shape_cast %7 : vector<2xf32> to vector<2x1xf32>
    %9 = arith.mulf %3, %5 : vector<2x1024xf32>
    %cst_6 = arith.constant dense<0.000000e+00> : vector<2xf32>
    %10 = vector.multi_reduction <add>, %9, %cst_6 [1] : vector<2x1024xf32> to vector<2xf32>
    %11 = vector.shape_cast %10 : vector<2xf32> to vector<2x1xf32>
    %12 = arith.mulf %4, %5 : vector<2x1024xf32>
    %cst_7 = arith.constant dense<0.000000e+00> : vector<2xf32>
    %13 = vector.multi_reduction <add>, %12, %cst_7 [1] : vector<2x1024xf32> to vector<2xf32>
    %14 = vector.shape_cast %13 : vector<2xf32> to vector<2x1xf32>
    %15 = arith.mulf %3, %3 : vector<2x1024xf32>
    %cst_8 = arith.constant dense<0.000000e+00> : vector<2xf32>
    %16 = vector.multi_reduction <add>, %15, %cst_8 [1] : vector<2x1024xf32> to vector<2xf32>
    %17 = vector.shape_cast %16 : vector<2xf32> to vector<2x1xf32>
    %18 = arith.mulf %4, %4 : vector<2x1024xf32>
    %cst_9 = arith.constant dense<0.000000e+00> : vector<2xf32>
    %19 = vector.multi_reduction <add>, %18, %cst_9 [1] : vector<2x1024xf32> to vector<2xf32>
    %20 = vector.shape_cast %19 : vector<2xf32> to vector<2x1xf32>
    %21 = arith.mulf %5, %5 : vector<2x1024xf32>
    %cst_10 = arith.constant dense<0.000000e+00> : vector<2xf32>
    %22 = vector.multi_reduction <add>, %21, %cst_10 [1] : vector<2x1024xf32> to vector<2xf32>
    %23 = vector.shape_cast %22 : vector<2xf32> to vector<2x1xf32>
    %c0_11 = arith.constant 0 : index
    %c0_12 = arith.constant 0 : index
    %24 = vector.load %arg6[%c0_11, %c0_12] : memref<2x6xf32, #tpu.memory_space<vmem>>, vector<2x6xf32>
    %25 = tpu.concatenate %8, %11, %14, %17, %20, %23 in 1 : vector<2x1xf32>, vector<2x1xf32>, vector<2x1xf32>, vector<2x1xf32>, vector<2x1xf32>, vector<2x1xf32> -> vector<2x6xf32>
    %26 = arith.addf %24, %25 : vector<2x6xf32>
    %c0_13 = arith.constant 0 : index
    %c0_14 = arith.constant 0 : index
    %27 = vector.load %arg6[%c0_13, %c0_14] : memref<2x6xf32, #tpu.memory_space<vmem>>, vector<2x6xf32>
    tpu.vector_store %arg6[%c0_13, %c0_14], %26 {strides = array<i32>} : memref<2x6xf32, #tpu.memory_space<vmem>>, vector<2x6xf32>,
    %c0_i32_15 = arith.constant 0 : i32
    %28 = arith.cmpi eq, %arg1, %c0_i32_15 : i32
    %29 = arith.extui %28 : i1 to i32
    %c0_i32_16 = arith.constant 0 : i32
    %30 = arith.cmpi ne, %29, %c0_i32_16 : i32
    scf.if %30 {
      %c0_17 = arith.constant 0 : index
      %c0_18 = arith.constant 0 : index
      %31 = vector.load %arg6[%c0_17, %c0_18] : memref<2x6xf32, #tpu.memory_space<vmem>>, vector<2x6xf32>
      %c0_19 = arith.constant 0 : index
      %c0_20 = arith.constant 0 : index
      %32 = vector.load %arg5[%c0_19, %c0_20] : memref<2x6xf32, #tpu.memory_space<vmem>>, vector<2x6xf32>
      tpu.vector_store %arg5[%c0_19, %c0_20], %31 {strides = array<i32>} : memref<2x6xf32, #tpu.memory_space<vmem>>, vector<2x6xf32>,
    } else {
    }
    return
  }
  func.func @transform_0(%arg0: i32, %arg1: i32) -> (i32, i32) {
    %c0_i32 = arith.constant 0 : i32
    return %arg0, %arg1 : i32, i32
  }
  func.func @transform_1(%arg0: i32, %arg1: i32) -> (i32, i32) {
    %c0_i32 = arith.constant 0 : i32
    return %arg0, %arg1 : i32, i32
  }
  func.func @transform_2(%arg0: i32, %arg1: i32) -> (i32, i32) {
    %c0_i32 = arith.constant 0 : i32
    return %arg0, %arg1 : i32, i32
  }
  func.func @transform_3(%arg0: i32, %arg1: i32) -> (i32, i32) {
    %c0_i32 = arith.constant 0 : i32
    %c0_i32_0 = arith.constant 0 : i32
    return %arg0, %c0_i32 : i32, i32
  }
}

</mosaic_0001>

<bundles_post_ra>
// kernel: tpu_custom_call.1
= control target key start
LH: loop header
LB: loop body
LE: loop exit
PB: predicated region body
PF: predicated region fallthrough
CT: control target
= control target key end

     0   :  { %8 = vsyncpa [#allocation4], 0  ;;  %s711_s0 = inlined_call_operand.hbm [shape: f32[2,1024], index: 0, kind: input, shape index: {}]   ;;  %s712_s1 = inlined_call_operand.hbm [shape: f32[2,1024], index: 1, kind: input, shape index: {}]   ;;  %s713_s2 = inlined_call_operand.hbm [shape: f32[2,1024], index: 2, kind: input, shape index: {}]   ;;  %s714_s3 = inlined_call_operand.hbm [shape: f32[2,6], index: 3, kind: output, shape index: {}]  }
   0x1   :  { %9 = vsyncpa [#allocation7], 0 }
   0x2   :  { %10 = vsyncpa [#allocation5], 0  ;;  %s568_s12 = smov [#allocation6]   ;;  %s569_s14 = smov [#allocation3]  }
   0x3   :  { %s27_s13 = sshll.u32 %s568_s12, 4  ;;  %s17_s15 = sshll.u32 %s569_s14, 4  ;;  %s28_s13 = int_to_ptr.vmem [resolvable:$true] %s27_s13  ;;  %s18_s15 = int_to_ptr.vmem [resolvable:$true] %s17_s15 }
   0x4   :  { %s490_s16 = scalar_lea.vmem %s28_s13, 256  ;;  %p495_p1 = scmp.lt.s32.totalorder %s28_s13, %s28_s13 }
   0x5   :  { %p491_p0 = scmp.ne.s32.totalorder %s28_s13, %s490_s16  ;;  %p496_p2 = scmp.lt.s32.totalorder %s490_s16, %s490_s16 }
   0x7   :  { %p497_p3 = por %p496_p2, %p495_p1 }
   0x9   :  { %p498_p4 = pnand %p497_p3, %p491_p0 }
   0xb   :  { %501 = shalt.err (!%p498_p4)
}
   0xc   :  { %30 = dma.hbm_to_vmem [thread:$0]  %s712_s1, 256, %s28_s13, [#allocation7]  }
   0xd   :  { %s510_s19 = scalar_lea.vmem %s18_s15, 256  ;;  %p515_p6 = scmp.lt.s32.totalorder %s18_s15, %s18_s15 }
   0xe   :  { %p511_p5 = scmp.ne.s32.totalorder %s18_s15, %s510_s19  ;;  %p516_p7 = scmp.lt.s32.totalorder %s510_s19, %s510_s19 }
  0x10   :  { %p517_p8 = por %p516_p7, %p515_p6 }
  0x12   :  { %p518_p9 = pnand %p517_p8, %p511_p5 }
  0x14   :  { %521 = shalt.err (!%p518_p9)
}
  0x15   :  { %20 = dma.hbm_to_vmem [thread:$0]  %s711_s0, 256, %s18_s15, [#allocation4]  }
  0x16   :  { %s570_s22 = smov [#allocation8]  }
  0x17   :  { %s37_s23 = sshll.u32 %s570_s22, 4  ;;  %s38_s23 = int_to_ptr.vmem [resolvable:$true] %s37_s23 }
  0x18   :  { %s530_s24 = scalar_lea.vmem %s38_s23, 256  ;;  %p535_p11 = scmp.lt.s32.totalorder %s38_s23, %s38_s23 }
  0x19   :  { %p531_p10 = scmp.ne.s32.totalorder %s38_s23, %s530_s24  ;;  %p536_p12 = scmp.lt.s32.totalorder %s530_s24, %s530_s24 }
  0x1b   :  { %p537_p13 = por %p536_p12, %p535_p11 }
  0x1d   :  { %p538_p0 = pnand %p537_p13, %p531_p10 }
  0x1f   :  { %541 = shalt.err (!%p538_p0)
}
  0x20   :  { %40 = dma.hbm_to_vmem [thread:$0]  %s713_s2, 256, %s38_s23, [#allocation7]  }
  0x21   :  { %562 = dma.done.wait [#allocation4], 256  }
  0x22   :  { %563 = vsyncadd [#allocation4], 4294967040 }
  0x23   :  { %564 = dma.done.wait [#allocation7], 512  }
  0x24   :  { %565 = vsyncadd [#allocation7], 4294966784  ;;  %v70_v0 = vlaneseq  ;;  %v571_v1 = vmov 1983009808   ;;  %v56_v6 = vld [vmem:[#allocation3] sm:$0xff]  ;;  %v57_v7 = vld [vmem:[#allocation3 + $0x8] sm:$0xff] }
  0x25   :  { %v68_v2 = vunpack.c.l.s4 %v571_v1  ;;  %v58_v8 = vld [vmem:[#allocation6] sm:$0xff]  ;;  %v605_v9 = vld [vmem:[#allocation6 + $0x8] sm:$0xff]  ;;  %vm108_vm0 = vcmask 1041408   ;;  %v607_v11 = vld [vmem:[#allocation8] sm:$0xff]  ;;  %v252_v15 = vmul.f32 %v56_v6, %v56_v6  ;;  %v613_v16 = vmul.f32 %v57_v7, %v57_v7  ;;  %s573_s0 = smov [#allocation9]  }
  0x26   :  { %v71_v3 = vshrl.u32 %v70_v0, 7  ;;  %v62_v10 = vmul.f32 %v58_v8, %v56_v6  ;;  %v609_v12 = vld [vmem:[#allocation8 + $0x8] sm:$0xff]  ;;  %v63_v13 = vmul.f32 %v605_v9, %v57_v7  ;;  %v189_v14 = vmul.f32 %v607_v11, %v58_v8  ;;  %s466_s2 = sshll.u32 %s573_s0, 4  ;;  %s467_s2 = int_to_ptr.vmem [resolvable:$true] %s466_s2 }
  0x27   :  { %v69_v4 = vunpack.c.0.s8 %v68_v2  ;;  %v190_v19 = vmul.f32 %v609_v12, %v605_v9  ;;  %v618_v20 = vmul.f32 %v58_v8, %v58_v8  ;;  %v126_v32 = vmul.f32 %v607_v11, %v56_v6  ;;  %s542_s26 = scalar_lea.vmem %s467_s2, 32  ;;  %p547_p2 = scmp.lt.s32.totalorder %s467_s2, %s467_s2 }
  0x28   :  { %v66_v17 = vcombine.high %v62_v10, %v62_v10  ;;  %v83_v21 = vcombine.high %v63_v13, %v63_v13  ;;  %v193_v23 = vcombine.high %v189_v14, %v189_v14  ;;  %v127_v39 = vmul.f32 %v609_v12, %v57_v7  ;;  %p543_p1 = scmp.ne.s32.totalorder %s467_s2, %s542_s26  ;;  %p548_p3 = scmp.lt.s32.totalorder %s542_s26, %s542_s26 }
  0x29   :  { %v603_v5 = vsub.s32 %v69_v4, %v71_v3  ;;  %v210_v28 = vcombine.high %v190_v19, %v190_v19  ;;  %v256_v40 = vcombine.high %v252_v15, %v252_v15  ;;  %v130_v60 = vcombine.high %v126_v32, %v126_v32 }
  0x2a   :  { %v147_v0 = vcombine.high %v127_v39, %v127_v39  ;;  %vm54_vm1 = vcmask 41984   ;;  %vm442_vm2 = vcmask 7168   ;;  %vm444_vm3 = vcmask 15360   ;;  %p549_p4 = por %p548_p3, %p547_p2 }
  0x2b   :  { %v73_v18 = vrot.slane %v62_v10, %v603_v5  ;;  %v90_v22 = vrot.slane %v63_v13, %v603_v5  ;;  %v200_v24 = vrot.slane %v189_v14, %v603_v5  ;;  %v80_v25 = vrot.slane %v66_v17, %v603_v5 }
  0x2c   :  { %v97_v29 = vrot.slane %v83_v21, %v603_v5  ;;  %v207_v31 = vrot.slane %v193_v23, %v603_v5  ;;  %v217_v43 = vrot.slane %v190_v19, %v603_v5  ;;  %v224_v44 = vrot.slane %v210_v28, %v603_v5  ;;  %p550_p5 = pnand %p549_p4, %p543_p1 }
  0x2d   :  { %v81_v26 = vcombine.high %v73_v18, %v73_v18  ;;  %v109_v27 = vsel %vm108_vm0, %v73_v18, 0.0  ;;  %v98_v30 = vcombine.high %v90_v22, %v90_v22  ;;  %v82_v33 = vcombine.high %v80_v25, %v80_v25 }
  0x2e   :  { %v112_v35 = vsel %vm108_vm0, %v80_v25, 0.0  ;;  %v208_v36 = vcombine.high %v200_v24, %v200_v24  ;;  %v99_v37 = vcombine.high %v97_v29, %v97_v29  ;;  %v209_v42 = vcombine.high %v207_v31, %v207_v31 }
  0x2f   :  { %v110_v34 = vsel %vm108_vm0, %v81_v26, 0.0  ;;  %v114_v41 = vsel %vm108_vm0, %v82_v33, 0.0  ;;  %v116_v46 = vsel %vm108_vm0, %v90_v22, 0.0  ;;  %v235_v47 = vsel %vm108_vm0, %v200_v24, 0.0 }
  0x30   :  { %v111_v38 = vadd.f32 %v110_v34, %v109_v27  ;;  %v236_v48 = vsel %vm108_vm0, %v208_v36, 0.0  ;;  %v118_v49 = vsel %vm108_vm0, %v98_v30, 0.0  ;;  %v225_v50 = vcombine.high %v217_v43, %v217_v43 }
  0x31   :  { %v237_v51 = vadd.f32 %v236_v48, %v235_v47  ;;  %v238_v52 = vsel %vm108_vm0, %v207_v31, 0.0  ;;  %v120_v54 = vsel %vm108_vm0, %v97_v29, 0.0  ;;  %v122_v55 = vsel %vm108_vm0, %v99_v37, 0.0 }
  0x32   :  { %v113_v45 = vadd.f32 %v112_v35, %v111_v38  ;;  %v240_v56 = vsel %vm108_vm0, %v209_v42, 0.0  ;;  %v226_v57 = vcombine.high %v224_v44, %v224_v44  ;;  %v242_v59 = vsel %vm108_vm0, %v217_v43, 0.0 }
  0x33   :  { %v239_v58 = vadd.f32 %v238_v52, %v237_v51  ;;  %v246_v62 = vsel %vm108_vm0, %v224_v44, 0.0  ;;  %v137_v63 = vrot.slane %v126_v32, %v603_v5  ;;  %v244_v2 = vsel %vm108_vm0, %v225_v50, 0.0 }
  0x34   :  { %v115_v53 = vadd.f32 %v114_v41, %v113_v45  ;;  %v144_v3 = vrot.slane %v130_v60, %v603_v5  ;;  %v154_v4 = vrot.slane %v127_v39, %v603_v5  ;;  %v161_v8 = vrot.slane %v147_v0, %v603_v5 }
  0x35   :  { %v241_v1 = vadd.f32 %v240_v56, %v239_v58  ;;  %v145_v7 = vcombine.high %v137_v63, %v137_v63  ;;  %v263_v10 = vrot.slane %v252_v15, %v603_v5  ;;  %v172_v17 = vsel %vm108_vm0, %v137_v63, 0.0 }
  0x36   :  { %v117_v61 = vadd.f32 %v116_v46, %v115_v53  ;;  %v146_v14 = vcombine.high %v144_v3, %v144_v3  ;;  %v270_v18 = vrot.slane %v256_v40, %v603_v5  ;;  %v248_v21 = vsel %vm108_vm0, %v226_v57, 0.0 }
  0x37   :  { %v243_v13 = vadd.f32 %v242_v59, %v241_v1  ;;  %v173_v22 = vsel %vm108_vm0, %v145_v7, 0.0  ;;  %v175_v23 = vsel %vm108_vm0, %v144_v3, 0.0  ;;  %v162_v25 = vcombine.high %v154_v4, %v154_v4 }
  0x38   :  { %v119_v6 = vadd.f32 %v118_v49, %v117_v61  ;;  %v163_v26 = vcombine.high %v161_v8, %v161_v8  ;;  %v174_v27 = vadd.f32 %v173_v22, %v172_v17  ;;  %v177_v15 = vsel %vm108_vm0, %v146_v14, 0.0 }
  0x39   :  { %v245_v24 = vadd.f32 %v244_v2, %v243_v13  ;;  %v179_v29 = vsel %vm108_vm0, %v154_v4, 0.0  ;;  %v271_v30 = vcombine.high %v263_v10, %v263_v10  ;;  %v272_v33 = vcombine.high %v270_v18, %v270_v18 }
  0x3a   :  { %v121_v19 = vadd.f32 %v120_v54, %v119_v6  ;;  %v176_v32 = vadd.f32 %v175_v23, %v174_v27  ;;  %v273_v34 = vcombine.high %v613_v16, %v613_v16  ;;  %v280_v35 = vrot.slane %v613_v16, %v603_v5 }
  0x3b   :  { %v247_v31 = vadd.f32 %v246_v62, %v245_v24  ;;  %v298_v36 = vsel %vm108_vm0, %v263_v10, 0.0  ;;  %v299_v37 = vsel %vm108_vm0, %v271_v30, 0.0  ;;  %v301_v38 = vsel %vm108_vm0, %v270_v18, 0.0 }
  0x3c   :  { %v123_v28 = vadd.f32 %v122_v55, %v121_v19  ;;  %v178_v40 = vadd.f32 %v177_v15, %v176_v32  ;;  %v287_v41 = vrot.slane %v273_v34, %v603_v5  ;;  %v300_v42 = vadd.f32 %v299_v37, %v298_v36 }
  0x3d   :  { %v249_v39 = vadd.f32 %v248_v21, %v247_v31  ;;  %v181_v43 = vsel %vm108_vm0, %v162_v25, 0.0  ;;  %v288_v44 = vcombine.high %v280_v35, %v280_v35  ;;  %v303_v45 = vsel %vm108_vm0, %v272_v33, 0.0 }
  0x3e   :  { %124 = vadd.xlane.f32.xlu0 %v123_v28  ;;  %v316_v46 = vmul.f32 %v605_v9, %v605_v9  ;;  %v180_v16 = vadd.f32 %v179_v29, %v178_v40  ;;  %v183_v47 = vsel %vm108_vm0, %v161_v8, 0.0  ;;  %v185_v48 = vsel %vm108_vm0, %v163_v26, 0.0 }
  0x3f   :  { %250 = vadd.xlane.f32.xlu1 %v249_v39  ;;  %v302_v49 = vadd.f32 %v301_v38, %v300_v42  ;;  %v305_v50 = vsel %vm108_vm0, %v280_v35, 0.0  ;;  %v319_v51 = vcombine.high %v618_v20, %v618_v20  ;;  %v326_v52 = vrot.slane %v618_v20, %v603_v5 }
  0x40   :  { %v336_v53 = vcombine.high %v316_v46, %v316_v46  ;;  %v182_v54 = vadd.f32 %v181_v43, %v180_v16  ;;  %v289_v55 = vcombine.high %v287_v41, %v287_v41  ;;  %v343_v9 = vrot.slane %v316_v46, %v603_v5 }
  0x41   :  { %v304_v56 = vadd.f32 %v303_v45, %v302_v49  ;;  %v307_v57 = vsel %vm108_vm0, %v288_v44, 0.0  ;;  %v333_v58 = vrot.slane %v319_v51, %v603_v5  ;;  %v334_v59 = vcombine.high %v326_v52, %v326_v52 }
  0x42   :  { %v361_v60 = vsel %vm108_vm0, %v326_v52, 0.0  ;;  %v184_v61 = vadd.f32 %v183_v47, %v182_v54  ;;  %v309_v63 = vsel %vm108_vm0, %v287_v41, 0.0  ;;  %v350_v20 = vrot.slane %v336_v53, %v603_v5 }
  0x43   :  { %v306_v62 = vadd.f32 %v305_v50, %v304_v56  ;;  %v335_v0 = vcombine.high %v333_v58, %v333_v58  ;;  %v362_v1 = vsel %vm108_vm0, %v334_v59, 0.0  ;;  %v364_v2 = vsel %vm108_vm0, %v333_v58, 0.0 }
  0x44   :  { %v186_v3 = vadd.f32 %v185_v48, %v184_v61  ;;  %v351_v6 = vcombine.high %v343_v9, %v343_v9  ;;  %v363_v7 = vadd.f32 %v362_v1, %v361_v60  ;;  %v311_v8 = vsel %vm108_vm0, %v289_v55, 0.0 }
  0x45   :  { %v308_v4 = vadd.f32 %v307_v57, %v306_v62  ;;  %v366_v10 = vsel %vm108_vm0, %v335_v0, 0.0  ;;  %v378_v13 = vmul.f32 %v607_v11, %v607_v11  ;;  %v379_v18 = vmul.f32 %v609_v12, %v609_v12 }
  0x46   :  { %187 = vadd.xlane.f32.xlu0 %v186_v3  ;;  %v365_v17 = vadd.f32 %v364_v2, %v363_v7  ;;  %v352_v19 = vcombine.high %v350_v20, %v350_v20  ;;  %v368_v21 = vsel %vm108_vm0, %v343_v9, 0.0  ;;  %v370_v26 = vsel %vm108_vm0, %v351_v6, 0.0 }
  0x47   :  { %v310_v14 = vadd.f32 %v309_v63, %v308_v4  ;;  %v382_v22 = vcombine.high %v378_v13, %v378_v13  ;;  %v389_v23 = vrot.slane %v378_v13, %v603_v5  ;;  %v399_v27 = vcombine.high %v379_v18, %v379_v18 }
  0x48   :  { %v367_v25 = vadd.f32 %v366_v10, %v365_v17  ;;  %v406_v15 = vrot.slane %v379_v18, %v603_v5  ;;  %v372_v30 = vsel %vm108_vm0, %v350_v20, 0.0  ;;  %v374_v36 = vsel %vm108_vm0, %v352_v19, 0.0 }
  0x49   :  { %v312_v24 = vadd.f32 %v311_v8, %v310_v14  ;;  %v396_v28 = vrot.slane %v382_v22, %v603_v5  ;;  %v397_v11 = vcombine.high %v389_v23, %v389_v23  ;;  %v424_v29 = vsel %vm108_vm0, %v389_v23, 0.0 }
  0x4a   :  { %v369_v12 = vadd.f32 %v368_v21, %v367_v25  ;;  %v413_v37 = vrot.slane %v399_v27, %v603_v5  ;;  %v414_v38 = vcombine.high %v406_v15, %v406_v15  ;;  %v431_v42 = vsel %vm108_vm0, %v406_v15, 0.0 }
  0x4b   :  { %313 = vadd.xlane.f32.xlu1 %v312_v24  ;;  %v398_v31 = vcombine.high %v396_v28, %v396_v28  ;;  %v425_v32 = vsel %vm108_vm0, %v397_v11, 0.0  ;;  %v427_v33 = vsel %vm108_vm0, %v396_v28, 0.0  ;;  %v572_v51 = vmov 0.0  }
  0x4c   :  { %v371_v34 = vadd.f32 %v370_v26, %v369_v12  ;;  %v426_v35 = vadd.f32 %v425_v32, %v424_v29  ;;  %v415_v45 = vcombine.high %v413_v37, %v413_v37  ;;  %v433_v46 = vsel %vm108_vm0, %v414_v38, 0.0  ;;  %55 = vst.msk [vmem:[#allocation2] sm:$0x3] %vm54_vm1, %v572_v51 }
  0x4d   :  { %v429_v39 = vsel %vm108_vm0, %v398_v31, 0.0  ;;  %v435_v47 = vsel %vm108_vm0, %v413_v37, 0.0  ;;  %vm446_vm4 = vcmask 23552   ;;  %vm448_vm5 = vcmask 31744  }
  0x4e   :  { %v373_v40 = vadd.f32 %v372_v30, %v371_v34  ;;  %v428_v41 = vadd.f32 %v427_v33, %v426_v35  ;;  %v437_v49 = vsel %vm108_vm0, %v415_v45, 0.0  ;;  %vm450_vm6 = vcmask 39936  }
  0x50   :  { %v375_v43 = vadd.f32 %v374_v36, %v373_v40  ;;  %v430_v44 = vadd.f32 %v429_v39, %v428_v41 }
  0x52   :  { %376 = vadd.xlane.f32.xlu0 %v375_v43  ;;  %v432_v16 = vadd.f32 %v431_v42, %v430_v44 }
  0x53   :  { %v441_v60 = vld [vmem:[#allocation2] sm:$0x3] }
  0x54   :  { %v434_v48 = vadd.f32 %v433_v46, %v432_v16 }
  0x56   :  { %v436_v5 = vadd.f32 %v435_v47, %v434_v48 }
  0x58   :  { %v438_v50 = vadd.f32 %v437_v49, %v436_v5 }
  0x5a   :  { %439 = vadd.xlane.f32.xlu1 %v438_v50 }
  0xc7   :  { %v125_v52 = vpop.xlane.xlu0 %124 }
  0xc8   :  { %v251_v53 = vpop.xlane.xlu1 %250 }
  0xcf   :  { %v188_v54 = vpop.xlane.xlu0 %187 }
  0xd0   :  { %v443_v55 = vsel %vm442_vm2, %v125_v52, %v188_v54 }
  0xd1   :  { %v445_v9 = vsel %vm444_vm3, %v443_v55, %v251_v53 }
  0xd4   :  { %v314_v56 = vpop.xlane.xlu1 %313 }
  0xd5   :  { %v447_v57 = vsel %vm446_vm4, %v445_v9, %v314_v56 }
  0xdb   :  { %v377_v58 = vpop.xlane.xlu0 %376 }
  0xdc   :  { %v449_v59 = vsel %vm448_vm5, %v447_v57, %v377_v58 }
  0xe3   :  { %v440_v61 = vpop.xlane.xlu1 %439 }
  0xe4   :  { %v451_v62 = vsel %vm450_vm6, %v449_v59, %v440_v61 }
  0xe5   :  { %v452_v63 = vadd.f32 %v451_v62, %v441_v60 }
  0xe7   :  { %454 = vst.msk [vmem:[#allocation2] sm:$0x3] %vm54_vm1, %v452_v63 }
  0xee   :  { %v458_v0 = vld [vmem:[#allocation2] sm:$0x3] }
  0xef   :  { %459 = vst.msk [vmem:[#allocation9] sm:$0x3] %vm54_vm1, %v458_v0 }
  0xf0   :  { %553 = shalt.err (!%p550_p5)
}
  0xf1   :  { %469 = dma.vmem_to_hbm [thread:$0]  %s467_s2, 32, %s714_s3, [#allocation5]  }
  0xf2   :  { %566 = dma.done.wait [#allocation5], 32  }
  0xf3   :  { %567 = vsyncadd [#allocation5], 4294967264 }
  0xf4   :  { %473 = vsyncpa [#allocation4], 1 }
  0xf5   :  { %474 = vsyncpa [#allocation7], 1 }
  0xf6   :  { %475 = vsyncpa [#allocation5], 1 }

</bundles_post_ra>
